<compile_context>
chip_gen: v5e
topology: v5e:2x2
jax: 0.10.0
libtpu: 0.0.40
codegen_flags: <defaults>
</compile_context>

<pallas_src>
import jax
import jax.numpy as jnp
from jax import lax
from jax.experimental import pallas as pl
from jax.experimental.pallas import tpu as pltpu


# ----------------------------- fused kernel ---------------------------------
# TODO(synk): BaseModel.layer is None (abstract); a Linear(n_dim, n_classes) stand-in is
#             used as the concrete layer here.
# TODO(synk): get_loss uses idx = all samples; an arbitrary idx_{split} subset would be
#             passed as an extra scalar-prefetch index array + in-kernel masking.
def _fused_kernel(b_sref, x_ref, y_ref, w_ref, logits_ref, weights_ref, loss_ref):
    # b_sref:   (1,)     SMEM f32  -- linear bias (scalar prefetch)
    # x_ref:    (N, D)   VMEM f32  -- this problem's features, natural layout
    # y_ref:    (1, N)   VMEM f32  -- hard 0/1 labels, lane-dense row
    # w_ref:    (1, D)   VMEM f32  -- linear weight row (shared across the grid)
    # logits_ref / weights_ref: (1, N) VMEM   loss_ref: (1, 1) VMEM
    n = y_ref.shape[-1]
    inv_n = 1.0 / float(n)

    # ---- BaseModel.get_weights : class-balance weights ----
    y = y_ref[...]                                    # (1, N)
    pos = (y == 1.0).astype(jnp.float32)
    neg = 1.0 - pos                                   # labels are hard 0/1 (original casts .long())
    num_pos = jnp.sum(pos)                            # single cross-lane reduce
    num_neg = float(n) - num_pos                      # derived; avoids a 2nd XLU reduction
    wts = (num_neg * inv_n) * pos + (num_pos * inv_n) * neg
    weights_ref[...] = wts

    # ---- BaseModel.forward : Linear(n_dim -> 1) stand-in ----
    # Contract on D with x in its natural (N, D) layout (rhs-transposed matmul):
    # (1, D) . (N, D)^T -> lane-dense (1, N) logits row.
    logits = lax.dot_general(
        w_ref[...], x_ref[...],
        dimension_numbers=(((1,), (1,)), ((), ())),
        preferred_element_type=jnp.float32) + b_sref[0]
    logits_ref[...] = logits

    # ---- BaseModel.get_loss : weighted BCE-with-logits, mean reduction ----
    per = (jnp.maximum(logits, 0.0) - logits * y
           + jnp.log1p(jnp.exp(-jnp.abs(logits))))    # numerically stable
    loss_ref[...] = jnp.sum(wts * per, keepdims=True) * inv_n


@jax.jit
def base_model_apply(x, y, w_lin, b_lin):
    """Fused, batched BaseModel step (one pallas_call for B problems).

    x:     (B, N, D) f32 features  (natural layout -- no pre-transpose)
    y:     (B, 1, N) f32 hard 0/1 labels (lane-dense rows)
    w_lin: (1, D)    f32 linear weight row (shared across the batch)
    b_lin: (1,)      f32 linear bias

    Returns (logits (B,1,N), class-balance weights (B,1,N), loss (B,1,1)) in
    kernel-native layouts; no post-call reshapes (caller squeezes if desired).
    """
    B, N, D = x.shape

    grid_spec = pltpu.PrefetchScalarGridSpec(
        num_scalar_prefetch=1,                                        # bias -> SMEM scalar
        grid=(B,),
        in_specs=[
            pl.BlockSpec((None, N, D), lambda i, b_sref: (i, 0, 0)),  # x  (per-problem)
            pl.BlockSpec((None, 1, N), lambda i, b_sref: (i, 0, 0)),  # y  (per-problem)
            pl.BlockSpec((1, D),       lambda i, b_sref: (0, 0)),     # w  (shared)
        ],
        out_specs=(
            pl.BlockSpec((None, 1, N), lambda i, b_sref: (i, 0, 0)),  # logits
            pl.BlockSpec((None, 1, N), lambda i, b_sref: (i, 0, 0)),  # weights
            pl.BlockSpec((None, 1, 1), lambda i, b_sref: (i, 0, 0)),  # loss (scalar/problem)
        ),
    )

    return pl.pallas_call(
        _fused_kernel,
        out_shape=(
            jax.ShapeDtypeStruct((B, 1, N), jnp.float32),
            jax.ShapeDtypeStruct((B, 1, N), jnp.float32),
            jax.ShapeDtypeStruct((B, 1, 1), jnp.float32),
        ),
        grid_spec=grid_spec,
        compiler_params=pltpu.CompilerParams(
            dimension_semantics=("parallel",)),   # shards the batch across v7x's 2 TCs
    )(b_lin, x, y, w_lin)


# ----------------------------- main ------------------------------------------
if __name__ == "__main__":
    B, N, D, C = 2, 256, 32, 1

    key = jax.random.PRNGKey(0)
    kx, ky, kw = jax.random.split(key, 3)

    # Inputs constructed directly in kernel layout (no wrapper casts / reshapes).
    x = jax.random.normal(kx, (B, N, D), dtype=jnp.float32)
    y = (jax.random.uniform(ky, (B, 1, N)) > 0.5).astype(jnp.float32)     # hard binary labels
    w_lin = (jax.random.normal(kw, (1, D), dtype=jnp.float32) / jnp.sqrt(D)).astype(jnp.float32)
    b_lin = jnp.zeros((C,), dtype=jnp.float32)

    logits, weights, loss = base_model_apply(x, y, w_lin, b_lin)
    jax.block_until_ready((logits, weights, loss))

    # ---- pure-JAX reference check ----
    pos = (y == 1.0).astype(jnp.float32)
    neg = 1.0 - pos
    num_pos = jnp.sum(pos, axis=-1, keepdims=True)
    num_neg = float(N) - num_pos
    weights_exp = (num_neg / N) * pos + (num_pos / N) * neg               # (B, 1, N)

    logits_exp = (jnp.einsum('bnd,cd->bcn', x, w_lin,
                             precision=lax.Precision.HIGHEST)
                  + b_lin.reshape(1, C, 1))                               # (B, 1, N)

    per_exp = (jnp.maximum(logits_exp, 0.0) - logits_exp * y
               + jnp.log1p(jnp.exp(-jnp.abs(logits_exp))))
    loss_exp = jnp.mean(weights_exp * per_exp, axis=-1, keepdims=True)    # (B, 1, 1)

    assert jnp.allclose(weights, weights_exp, atol=1e-5)
    assert jnp.allclose(logits, logits_exp, rtol=1e-3, atol=1e-3)
    assert jnp.allclose(loss, loss_exp, rtol=1e-3, atol=1e-3)

    print("KERNEL_OK")
</pallas_src>

<mosaic_0001>
module attributes {stable_mosaic.version = 11 : i64} {
  func.func @_fused_kernel(%arg0: i32, %arg1: memref<1xf32, #tpu.memory_space<smem>>, %arg2: memref<1x256x32xf32, #tpu.memory_space<vmem>>, %arg3: memref<1x1x256xf32, #tpu.memory_space<vmem>>, %arg4: memref<1x32xf32, #tpu.memory_space<vmem>>, %arg5: memref<1x1x256xf32, #tpu.memory_space<vmem>>, %arg6: memref<1x1x256xf32, #tpu.memory_space<vmem>>, %arg7: memref<1x1x1xf32, #tpu.memory_space<vmem>>) attributes {dimension_semantics = [#tpu.dimension_semantics<parallel>], iteration_bounds = array<i64: 2>, scalar_prefetch = 1 : i64, scratch_operands = 0 : i64, tpu.core_type = #tpu.core_type<tc>, window_params = [{transform_indices = @transform_0, window_bounds = array<i64: 1, 256, 32>}, {transform_indices = @transform_1, window_bounds = array<i64: 1, 1, 256>}, {pipeline_mode = #tpu.pipeline_mode<synchronous>, transform_indices = @transform_2, window_bounds = array<i64: 1, 32>}, {transform_indices = @transform_3, window_bounds = array<i64: 1, 1, 256>}, {transform_indices = @transform_4, window_bounds = array<i64: 1, 1, 256>}, {transform_indices = @transform_5, window_bounds = array<i64: 1, 1, 1>}]} {
    %c0 = arith.constant 0 : index
    %c0_0 = arith.constant 0 : index
    %c0_1 = arith.constant 0 : index
    %0 = vector.load %arg3[%c0, %c0_0, %c0_1] : memref<1x1x256xf32, #tpu.memory_space<vmem>>, vector<1x1x256xf32>
    %1 = vector.shape_cast %0 : vector<1x1x256xf32> to vector<1x256xf32>
    %cst = arith.constant 1.000000e+00 : f32
    %2 = vector.broadcast %cst : f32 to vector<1x256xf32>
    %3 = arith.cmpf oeq, %1, %2 : vector<1x256xf32>
    %4 = arith.extui %3 : vector<1x256xi1> to vector<1x256xi32>
    %5 = arith.sitofp %4 : vector<1x256xi32> to vector<1x256xf32>
    %cst_2 = arith.constant 1.000000e+00 : f32
    %6 = vector.broadcast %cst_2 : f32 to vector<1x256xf32>
    %7 = arith.subf %6, %5 : vector<1x256xf32>
    %8 = vector.shape_cast %5 : vector<1x256xf32> to vector<1x1x256xf32>
    %cst_3 = arith.constant dense<0.000000e+00> : vector<1xf32>
    %9 = vector.multi_reduction <add>, %8, %cst_3 [1, 2] : vector<1x1x256xf32> to vector<1xf32>
    %10 = vector.shape_cast %9 : vector<1xf32> to vector<1x1x1xf32>
    %11 = vector.extract %10[0, 0, 0] : f32 from vector<1x1x1xf32>
    %cst_4 = arith.constant 2.560000e+02 : f32
    %12 = arith.subf %cst_4, %11 : f32
    %cst_5 = arith.constant 3.906250e-03 : f32
    %13 = arith.mulf %12, %cst_5 : f32
    %14 = vector.broadcast %13 : f32 to vector<1x256xf32>
    %15 = arith.mulf %14, %5 : vector<1x256xf32>
    %cst_6 = arith.constant 3.906250e-03 : f32
    %16 = arith.mulf %11, %cst_6 : f32
    %17 = vector.broadcast %16 : f32 to vector<1x256xf32>
    %18 = arith.mulf %17, %7 : vector<1x256xf32>
    %19 = arith.addf %15, %18 : vector<1x256xf32>
    %c0_7 = arith.constant 0 : index
    %c0_8 = arith.constant 0 : index
    %c0_9 = arith.constant 0 : index
    %20 = vector.load %arg6[%c0_7, %c0_8, %c0_9] : memref<1x1x256xf32, #tpu.memory_space<vmem>>, vector<1x1x256xf32>
    %21 = vector.shape_cast %20 : vector<1x1x256xf32> to vector<1x256xf32>
    %22 = vector.shape_cast %19 : vector<1x256xf32> to vector<1x1x256xf32>
    tpu.vector_store %arg6[%c0_7, %c0_8, %c0_9], %22 {strides = array<i32>} : memref<1x1x256xf32, #tpu.memory_space<vmem>>, vector<1x1x256xf32>,
    %c0_10 = arith.constant 0 : index
    %c0_11 = arith.constant 0 : index
    %23 = vector.load %arg4[%c0_10, %c0_11] : memref<1x32xf32, #tpu.memory_space<vmem>>, vector<1x32xf32>
    %c0_12 = arith.constant 0 : index
    %c0_13 = arith.constant 0 : index
    %c0_14 = arith.constant 0 : index
    %24 = vector.load %arg2[%c0_12, %c0_13, %c0_14] : memref<1x256x32xf32, #tpu.memory_space<vmem>>, vector<1x256x32xf32>
    %25 = vector.shape_cast %24 : vector<1x256x32xf32> to vector<256x32xf32>
    %cst_15 = arith.constant dense<0.000000e+00> : vector<1x256xf32>
    %26 = tpu.matmul %23, %25, %cst_15 {dimension_numbers = #tpu.dot_dimension_numbers<[1], [1], [0], [0], [0, 0, 1, 0], [], []>} : vector<1x32xf32>, vector<256x32xf32>, vector<1x256xf32> -> vector<1x256xf32>
    %c0_16 = arith.constant 0 : index
    %27 = memref.load %arg1[%c0_16] : memref<1xf32, #tpu.memory_space<smem>>
    %28 = vector.broadcast %27 : f32 to vector<1x256xf32>
    %29 = arith.addf %26, %28 : vector<1x256xf32>
    %c0_17 = arith.constant 0 : index
    %c0_18 = arith.constant 0 : index
    %c0_19 = arith.constant 0 : index
    %30 = vector.load %arg5[%c0_17, %c0_18, %c0_19] : memref<1x1x256xf32, #tpu.memory_space<vmem>>, vector<1x1x256xf32>
    %31 = vector.shape_cast %30 : vector<1x1x256xf32> to vector<1x256xf32>
    %32 = vector.shape_cast %29 : vector<1x256xf32> to vector<1x1x256xf32>
    tpu.vector_store %arg5[%c0_17, %c0_18, %c0_19], %32 {strides = array<i32>} : memref<1x1x256xf32, #tpu.memory_space<vmem>>, vector<1x1x256xf32>,
    %cst_20 = arith.constant 0.000000e+00 : f32
    %33 = vector.broadcast %cst_20 : f32 to vector<1x256xf32>
    %34 = arith.maximumf %29, %33 : vector<1x256xf32>
    %35 = arith.mulf %29, %1 : vector<1x256xf32>
    %36 = arith.subf %34, %35 : vector<1x256xf32>
    %37 = math.absf %29 : vector<1x256xf32>
    %cst_21 = arith.constant 0.000000e+00 : f32
    %38 = vector.broadcast %cst_21 : f32 to vector<1x256xf32>
    %39 = arith.subf %38, %37 : vector<1x256xf32>
    %40 = math.exp %39 : vector<1x256xf32>
    %41 = math.log1p %40 : vector<1x256xf32>
    %42 = arith.addf %36, %41 : vector<1x256xf32>
    %43 = arith.mulf %19, %42 : vector<1x256xf32>
    %44 = vector.shape_cast %43 : vector<1x256xf32> to vector<1x1x256xf32>
    %cst_22 = arith.constant dense<0.000000e+00> : vector<1xf32>
    %45 = vector.multi_reduction <add>, %44, %cst_22 [1, 2] : vector<1x1x256xf32> to vector<1xf32>
    %46 = vector.shape_cast %45 : vector<1xf32> to vector<1x1x1xf32>
    %47 = vector.extract %46[0, 0, 0] : f32 from vector<1x1x1xf32>
    %48 = vector.broadcast %47 : f32 to vector<1x1xf32>
    %cst_23 = arith.constant 3.906250e-03 : f32
    %49 = vector.broadcast %cst_23 : f32 to vector<1x1xf32>
    %50 = arith.mulf %48, %49 : vector<1x1xf32>
    %c0_24 = arith.constant 0 : index
    %c0_25 = arith.constant 0 : index
    %c0_26 = arith.constant 0 : index
    %51 = vector.load %arg7[%c0_24, %c0_25, %c0_26] : memref<1x1x1xf32, #tpu.memory_space<vmem>>, vector<1x1x1xf32>
    %52 = vector.shape_cast %51 : vector<1x1x1xf32> to vector<1x1xf32>
    %53 = vector.shape_cast %50 : vector<1x1xf32> to vector<1x1x1xf32>
    tpu.vector_store %arg7[%c0_24, %c0_25, %c0_26], %53 {strides = array<i32>} : memref<1x1x1xf32, #tpu.memory_space<vmem>>, vector<1x1x1xf32>,
    return
  }
  func.func @transform_0(%arg0: i32, %arg1: memref<1xf32, #tpu.memory_space<smem>>) -> (i32, i32, i32) {
    %c0_i32 = arith.constant 0 : i32
    %c0_i32_0 = arith.constant 0 : i32
    %c0_i32_1 = arith.constant 0 : i32
    return %arg0, %c0_i32, %c0_i32_0 : i32, i32, i32
  }
  func.func @transform_1(%arg0: i32, %arg1: memref<1xf32, #tpu.memory_space<smem>>) -> (i32, i32, i32) {
    %c0_i32 = arith.constant 0 : i32
    %c0_i32_0 = arith.constant 0 : i32
    %c0_i32_1 = arith.constant 0 : i32
    return %arg0, %c0_i32, %c0_i32_0 : i32, i32, i32
  }
  func.func @transform_2(%arg0: i32, %arg1: memref<1xf32, #tpu.memory_space<smem>>) -> (i32, i32) {
    %c0_i32 = arith.constant 0 : i32
    %c0_i32_0 = arith.constant 0 : i32
    %c0_i32_1 = arith.constant 0 : i32
    return %c0_i32, %c0_i32_0 : i32, i32
  }
  func.func @transform_3(%arg0: i32, %arg1: memref<1xf32, #tpu.memory_space<smem>>) -> (i32, i32, i32) {
    %c0_i32 = arith.constant 0 : i32
    %c0_i32_0 = arith.constant 0 : i32
    %c0_i32_1 = arith.constant 0 : i32
    return %arg0, %c0_i32, %c0_i32_0 : i32, i32, i32
  }
  func.func @transform_4(%arg0: i32, %arg1: memref<1xf32, #tpu.memory_space<smem>>) -> (i32, i32, i32) {
    %c0_i32 = arith.constant 0 : i32
    %c0_i32_0 = arith.constant 0 : i32
    %c0_i32_1 = arith.constant 0 : i32
    return %arg0, %c0_i32, %c0_i32_0 : i32, i32, i32
  }
  func.func @transform_5(%arg0: i32, %arg1: memref<1xf32, #tpu.memory_space<smem>>) -> (i32, i32, i32) {
    %c0_i32 = arith.constant 0 : i32
    %c0_i32_0 = arith.constant 0 : i32
    %c0_i32_1 = arith.constant 0 : i32
    return %arg0, %c0_i32, %c0_i32_0 : i32, i32, i32
  }
}

</mosaic_0001>

<bundles_post_ra>
// kernel: base_model_apply.1
= control target key start
LH: loop header
LB: loop body
LE: loop exit
PB: predicated region body
PF: predicated region fallthrough
CT: control target
= control target key end

     0   :  { %s1161_s0 = inlined_call_operand.<no memory space> [shape: f32[1], index: 0, kind: input, shape index: {}]   ;;  %s1162_s1 = inlined_call_operand.vmem [shape: f32[2,256,32], index: 1, kind: input, shape index: {}]   ;;  %s1163_s2 = inlined_call_operand.vmem [shape: f32[2,1,256], index: 2, kind: input, shape index: {}]   ;;  %s1164_s3 = inlined_call_operand.vmem [shape: f32[1,32], index: 3, kind: input, shape index: {}]   ;;  %s1165_s4 = inlined_call_operand.hbm [shape: f32[2,1,256], index: 4, kind: output, shape index: {0}]   ;;  %s1166_s5 = inlined_call_operand.hbm [shape: f32[2,1,256], index: 5, kind: output, shape index: {1}]   ;;  %s1167_s6 = inlined_call_operand.vmem [shape: f32[2,1,1], index: 6, kind: output, shape index: {2}]  }
   0x1   :  { %1168 = sst [smem:[#allocation10_spill]] %s1162_s1 }
   0x2   :  { %1169 = sst [smem:[#allocation11_spill]] %s1163_s2 }
   0x3   :  { %12 = sst [smem:[#allocation3]] %s1161_s0 }
   0x4   :  { %13 = vsyncpa [#allocation5], 0 }
   0x5   :  { %15 = vsyncpa [#allocation5 + $0x1], 0 }
   0x6   :  { %16 = vsyncpa [#allocation7], 0 }
   0x7   :  { %18 = vsyncpa [#allocation7 + $0x1], 0  ;;  %s951_s23 = smov 0   ;;  %s953_s24 = smov 0  }
   0x8   :  { %s955_s25 = smov 0   ;;  %s957_s26 = smov 0  }
   0x9 LB: > { %s972_s0 = sadd.s32 4294967295, %s910_s26   ;;  %s708_s27 = sadd.s32 4294967294, %s910_s26   ;;  %s910_s26 = sphi %s957_s26, %s1177_s26   ;;  %s906_s25 = sphi %s955_s25, %s1176_s25   ;;  %s902_s24 = sphi %s953_s24, %s1175_s24   ;;  %s898_s23 = sphi %s951_s23, %s1174_s23  }
   0xa   : > { %s976_s28 = sadd.s32 1, %s910_s26   ;;  %s104_s29 = sadd.s32 1, %s906_s25 }
   0xb   : > { %s101_s30 = ssub.s32 %s910_s26, %s976_s28  ;;  %p114_p0 = scmp.ne.s32.totalorder %s906_s25, %s902_s24 }
   0xc   : > { %p102_p1 = scmp.eq.s32.totalorder %s101_s30, 0  ;;  %p115_p2 = scmp.eq.s32.totalorder %s972_s0, 1 }
   0xd   : > { %p120_p3 = scmp.ne.s32.totalorder %s902_s24, %s898_s23  ;;  %p121_p4 = scmp.eq.s32.totalorder %s708_s27, 1 }
   0xe   : > { %s987_s7 = scalar_select %p102_p1, %s906_s25, %s104_s29  }
   0xf   : > { %p989_p5 = por %p115_p2, %p114_p0  ;;  %p993_p6 = por %p121_p4, %p120_p3 }
  0x10   : > { %p711_p7 = scmp.ge.s32.totalorder %s910_s26, 1  ;;  %p209_p8 = scmp.lt.s32.totalorder %s910_s26, 3 }
  0x12   : > { %p210_p9 = pnand %p711_p7, %p209_p8 }
  0x13   : > { %p249_p10 = scmp.lt.s32.totalorder (!%p210_p9), %s972_s0, 1  ;;  %s1172_s1 = sld [smem:[#allocation10_spill]] (!%p210_p9) }
  0x14   : > { %213 = sbr.rel (%p210_p9) target bundleno = 441 (0x1b9), region = 32  ;;  %s1173_s2 = sld [smem:[#allocation11_spill]] (!%p210_p9) }
  0x15   : > { %s330_s21 = sld [smem:[#allocation3]] (!%p210_p9)  ;;  %s1092_s22 = sand.u32 (!%p210_p9), 1, %s902_s24  }
  0x16   : > { %s712_s29 = sshll.u32 (!%p210_p9), %s1092_s22, 1  ;;  %s836_s16 = scalar_lea.hbm (!%p210_p9), %s1165_s4, 4 }
  0x17   : > { %s1098_s13 = scalar_lea.vmem (!%p210_p9), [#allocation4], %s712_s29  ;;  %s1101_s14 = scalar_lea.vmem (!%p210_p9), [#allocation6], %s712_s29 }
  0x19   : > { %s1001_s10 = scalar_select %p249_p10, %s972_s0, 1  ;;  %vm332_vm0 = vcmask 261120   ;;  %v912_v7 = vmov 0.0   ;;  %vm271_vm2 = vcmask 1040384   ;;  %v297_v40 = vld [vmem:[%s1164_s3] sm:$0x1]  ;;  %v292_v51 = vlaneseq }
  0x1b   : > { %s758_s11 = sshll.u32 %s1001_s10, 8  ;;  %s716_s12 = sshll.u32 %s1001_s10, 1  ;;  %v331_v48 = vstv %s330_s21  ;;  %vm294_vm3 = vcmp.lt.s32.totalorder %v292_v51, 256 }
  0x1c   : > { %s1008_s15 = scalar_lea.vmem %s1172_s1, %s758_s11  ;;  %s257_s18 = scalar_lea.vmem %s1173_s2, %s716_s12 }
  0x1d   : > { %v313_v0 = vld [vmem:[%s1008_s15 + $0x78] sm:$0xff]  ;;  %v312_v2 = vld [vmem:[%s1008_s15 + $0x70] sm:$0xff]  ;;  %v1019_v4 = vld [vmem:[%s257_s18] sm:$0x3] }
  0x1e   : > { %v329_v1 = vld [vmem:[%s1008_s15 + $0xf8] sm:$0xff]  ;;  %718 = vmatpush.xpose.msk.msra.mxu0 %vm332_vm0, %v313_v0  ;;  %v328_v3 = vld [vmem:[%s1008_s15 + $0xf0] sm:$0xff]  ;;  %vm262_vm1 = vcmp.eq.f32.partialorder %v1019_v4, 1.0  ;;  %v311_v5 = vld [vmem:[%s1008_s15 + $0x68] sm:$0xff] }
  0x1f   : > { %735 = vmatpush.xpose.msk.msra.mxu1 %vm332_vm0, %v329_v1  ;;  %v327_v6 = vld [vmem:[%s1008_s15 + $0xe8] sm:$0xff]  ;;  %v1026_v8 = vsel %vm262_vm1, 1.0, %v912_v7  ;;  %v310_v13 = vld [vmem:[%s1008_s15 + $0x60] sm:$0xff]  ;;  %v309_v16 = vld [vmem:[%s1008_s15 + $0x58] sm:$0xff] }
  0x20   : > { %v267_v9 = vperm.slane %v1026_v8, 0  ;;  %v268_v10 = vperm.slane %v1026_v8, 1  ;;  %v326_v14 = vld [vmem:[%s1008_s15 + $0xe0] sm:$0xff]  ;;  %v325_v17 = vld [vmem:[%s1008_s15 + $0xd8] sm:$0xff]  ;;  %v308_v18 = vld [vmem:[%s1008_s15 + $0x50] sm:$0xff]  ;;  %v265_v54 = vsub.f32 1.0, %v1026_v8 }
  0x21   : > { %v324_v19 = vld [vmem:[%s1008_s15 + $0xd0] sm:$0xff]  ;;  %v307_v20 = vld [vmem:[%s1008_s15 + $0x48] sm:$0xff]  ;;  %v306_v22 = vld [vmem:[%s1008_s15 + $0x40] sm:$0xff] }
  0x22   : > { %719 = vmatpush.xpose.msk.msra.mxu0 %vm332_vm0, %v312_v2  ;;  %v272_v11 = vsel %vm271_vm2, %v267_v9, 0.0  ;;  %v273_v12 = vsel %vm271_vm2, %v268_v10, 0.0  ;;  %v323_v21 = vld [vmem:[%s1008_s15 + $0xc8] sm:$0xff]  ;;  %v322_v23 = vld [vmem:[%s1008_s15 + $0xc0] sm:$0xff]  ;;  %v305_v24 = vld [vmem:[%s1008_s15 + $0x38] sm:$0xff] }
  0x23   : > { %736 = vmatpush.xpose.msk.msra.mxu1 %vm332_vm0, %v328_v3  ;;  %v274_v15 = vadd.f32 %v273_v12, %v272_v11  ;;  %v321_v25 = vld [vmem:[%s1008_s15 + $0xb8] sm:$0xff]  ;;  %v304_v26 = vld [vmem:[%s1008_s15 + $0x30] sm:$0xff]  ;;  %v303_v28 = vld [vmem:[%s1008_s15 + $0x28] sm:$0xff]  ;;  %v482_v11 = vperm.slane %v1019_v4, 1  ;;  %v481_v12 = vperm.slane %v1019_v4, 0 }
  0x24   : > { %v320_v27 = vld [vmem:[%s1008_s15 + $0xb0] sm:$0xff]  ;;  %v319_v29 = vld [vmem:[%s1008_s15 + $0xa8] sm:$0xff]  ;;  %v302_v30 = vld [vmem:[%s1008_s15 + $0x20] sm:$0xff] }
  0x25   : > { %275 = vadd.xlane.f32.xlu0 %v274_v15  ;;  %v318_v31 = vld [vmem:[%s1008_s15 + $0xa0] sm:$0xff]  ;;  %v301_v32 = vld [vmem:[%s1008_s15 + $0x18] sm:$0xff]  ;;  %v300_v34 = vld [vmem:[%s1008_s15 + $0x10] sm:$0xff] }
  0x26   : > { %720 = vmatpush.xpose.msk.msra.mxu0 %vm332_vm0, %v311_v5  ;;  %v317_v33 = vld [vmem:[%s1008_s15 + $0x98] sm:$0xff]  ;;  %v316_v35 = vld [vmem:[%s1008_s15 + $0x90] sm:$0xff]  ;;  %v299_v36 = vld [vmem:[%s1008_s15 + $0x8] sm:$0xff] }
  0x27   : > { %737 = vmatpush.xpose.msk.msra.mxu1 %vm332_vm0, %v327_v6  ;;  %v315_v37 = vld [vmem:[%s1008_s15 + $0x88] sm:$0xff]  ;;  %v298_v38 = vld [vmem:[%s1008_s15] sm:$0xff] }
  0x28   : > { %v314_v39 = vld [vmem:[%s1008_s15 + $0x80] sm:$0xff]  ;;  %s754_s15 = sshll.u32 %s972_s0, 1 }
  0x29   : > { %s563_s18 = scalar_lea.hbm %s1165_s4, %s754_s15  ;;  %s577_s21 = scalar_lea.hbm %s1166_s5, %s754_s15 }
  0x2a   : > { %721 = vmatpush.xpose.msk.msra.mxu0 %vm332_vm0, %v310_v13  ;;  %s567_s29 = sshll.u32 %s563_s18, 4  ;;  %s568_s29 = int_to_ptr.hbm [resolvable:$true] %s567_s29 }
  0x2b   : > { %738 = vmatpush.xpose.msk.msra.mxu1 %vm332_vm0, %v326_v14 }
  0x2e   : > { %722 = vmatpush.xpose.msk.msra.mxu0 %vm332_vm0, %v309_v16 }
  0x2f   : > { %739 = vmatpush.xpose.msk.msra.mxu1 %vm332_vm0, %v325_v17 }
  0x32   : > { %723 = vmatpush.xpose.msk.msra.mxu0 %vm332_vm0, %v308_v18 }
  0x33   : > { %740 = vmatpush.xpose.msk.msra.mxu1 %vm332_vm0, %v324_v19 }
  0x36   : > { %724 = vmatpush.xpose.msk.msra.mxu0 %vm332_vm0, %v307_v20 }
  0x37   : > { %741 = vmatpush.xpose.msk.msra.mxu1 %vm332_vm0, %v323_v21 }
  0x3a   : > { %725 = vmatpush.xpose.msk.msra.mxu0 %vm332_vm0, %v306_v22 }
  0x3b   : > { %742 = vmatpush.xpose.msk.msra.mxu1 %vm332_vm0, %v322_v23 }
  0x3e   : > { %726 = vmatpush.xpose.msk.msra.mxu0 %vm332_vm0, %v305_v24 }
  0x3f   : > { %743 = vmatpush.xpose.msk.msra.mxu1 %vm332_vm0, %v321_v25 }
  0x42   : > { %727 = vmatpush.xpose.msk.msra.mxu0 %vm332_vm0, %v304_v26 }
  0x43   : > { %744 = vmatpush.xpose.msk.msra.mxu1 %vm332_vm0, %v320_v27 }
  0x46   : > { %728 = vmatpush.xpose.msk.msra.mxu0 %vm332_vm0, %v303_v28 }
  0x47   : > { %745 = vmatpush.xpose.msk.msra.mxu1 %vm332_vm0, %v319_v29 }
  0x4a   : > { %729 = vmatpush.xpose.msk.msra.mxu0 %vm332_vm0, %v302_v30 }
  0x4b   : > { %746 = vmatpush.xpose.msk.msra.mxu1 %vm332_vm0, %v318_v31 }
  0x4e   : > { %730 = vmatpush.xpose.msk.msra.mxu0 %vm332_vm0, %v301_v32 }
  0x4f   : > { %747 = vmatpush.xpose.msk.msra.mxu1 %vm332_vm0, %v317_v33 }
  0x52   : > { %731 = vmatpush.xpose.msk.msra.mxu0 %vm332_vm0, %v300_v34 }
  0x53   : > { %748 = vmatpush.xpose.msk.msra.mxu1 %vm332_vm0, %v316_v35 }
  0x56   : > { %732 = vmatpush.xpose.msk.msra.mxu0 %vm332_vm0, %v299_v36 }
  0x57   : > { %749 = vmatpush.xpose.msk.msra.mxu1 %vm332_vm0, %v315_v37 }
  0x5a   : > { %733 = vmatpush.xpose.msk.msra.mxu0 %vm332_vm0, %v298_v38 }
  0x5b   : > { %750 = vmatpush.xpose.msk.msra.mxu1 %vm332_vm0, %v314_v39 }
  0x5d   : > { %734 = vmatmul.msk.f32.vlgmr.msra.gmra.mxu0 %vm332_vm0, %v297_v40 }
  0x5e   : > { %751 = vmatmul.msk.f32.vlgmr.msra.gmra.mxu1 %vm332_vm0, %v297_v40 }
  0x98   : > { %v276_v41 = vpop.xlane.xlu0 %275 }
  0x99   : > { %v277_v42 = vrot.slane %v276_v41, 4 }
  0x9b   : > { %v278_v43 = vadd.f32 %v277_v42, %v276_v41 }
  0x9d   : > { %v279_v44 = vrot.slane %v278_v43, 2 }
  0x9f   : > { %v280_v45 = vadd.f32 %v279_v44, %v278_v43 }
  0xa1   : > { %v281_v46 = vrot.slane %v280_v45, 1 }
  0xa3   : > { %v282_v47 = vadd.f32 %v281_v46, %v280_v45 }
  0xa5   : > { %759 = vpush %v282_v47 }
  0xd6   : > { %s760_s27 = spop %759 }
  0xd7   : > { %s284_s30 = ssub.f32 256.0, %s760_s27  ;;  %s288_s11 = smul.f32 0.00390625, %s760_s27 }
  0xd8   : > { %s565_s27 = sshll.u32 %s1098_s13, 4  ;;  %s566_s27 = int_to_ptr.vmem [resolvable:$true] %s565_s27 }
  0xd9   : > { %s285_s12 = smul.f32 0.00390625, %s284_s30  ;;  %v289_v58 = vstv %s288_s11  ;;  %s545_s30 = scalar_lea.sflag [#allocation5], %s1092_s22 }
  0xda   : > { %v449_v49 = vpop.f32.mrf.mxu0  ;;  %v290_v61 = vmul.f32 %v289_v58, %v265_v54  ;;  %s830_s11 = sshra.s32 %s568_s29, 4  ;;  %s831_s11 = int_to_ptr.hbm [resolvable:$true] %s830_s11 }
  0xdb   : > { %v469_v50 = vpop.f32.mrf.mxu1  ;;  %v450_v52 = vadd.f32 %v449_v49, %v331_v48  ;;  %v286_v60 = vstv %s285_s12  ;;  %s832_s12 = scalar_lea.hbm %s831_s11, 2  ;;  %p837_p0 = scmp.lt.s32.totalorder %s831_s11, %s1165_s4 }
  0xdc   : > { %v470_v53 = vadd.f32 %v469_v50, %v331_v48  ;;  %v287_v63 = vmul.f32 %v1026_v8, %v286_v60  ;;  %p833_p11 = scmp.ne.s32.totalorder %s831_s11, %s832_s12  ;;  %p838_p1 = scmp.lt.s32.totalorder %s836_s16, %s832_s12 }
  0xdd   : > { %v489_v55 = vand.u32 2147483647, %v450_v52  ;;  %v478_v21 = vmax.f32 %v450_v52, 0.0  ;;  %v485_v22 = vmul.f32 %v481_v12, %v450_v52 }
  0xde   : > { %v474_v56 = vrot.slane %v470_v53, 7  ;;  %v490_v57 = vand.u32 2147483647, %v470_v53  ;;  %v291_v3 = vadd.f32 %v290_v61, %v287_v63  ;;  %v479_v15 = vmax.f32 %v470_v53, 0.0  ;;  %p834_p12 = pnand %p833_p11, %p989_p5  ;;  %p839_p2 = por %p838_p1, %p837_p0 }
  0xdf   : > { %v491_v59 = vsub.f32 0.0, %v489_v55  ;;  %v486_v16 = vmul.f32 %v482_v11, %v470_v53  ;;  %v487_v29 = vsub.f32 %v478_v21, %v485_v22 }
  0xe0   : > { %v492_v62 = vsub.f32 0.0, %v490_v57  ;;  %v475_v0 = vsel %vm271_vm2, %v450_v52, %v474_v56  ;;  %296 = vst.msk [vmem:[%s1101_s14] sm:$0x3] %vm294_vm3, %v291_v3  ;;  %p835_p13 = pneg %p834_p12 }
  0xe1   : > { %v493_v1 = vmul.f32 1.442695, %v491_v59  ;;  %477 = vst.msk [vmem:[%s1098_s13] sm:$0x3] %vm294_vm3, %v475_v0  ;;  %v488_v27 = vsub.f32 %v479_v15, %v486_v16 }
  0xe2   : > { %v495_v2 = vmul.f32 1.442695, %v492_v62  ;;  %p840_p3 = pnand %p839_p2, %p835_p13 }
  0xe3   : > { %808 = vpow2.f32 %v493_v1 }
  0xe4   : > { %810 = vpow2.f32 %v495_v2 }
  0xe9   : > { %v809_v5 = vpop.eup %808 }
  0xea   : > { %v811_v6 = vpop.eup %810  ;;  %v497_v7 = vadd.f32 1.0, %v809_v5  ;;  %v500_v8 = vmul.f32 -0.5, %v809_v5  ;;  %v503_v17 = vand.u32 2147483647, %v809_v5 }
  0xeb   : > { %v506_v9 = vadd.f32 1.0, %v811_v6  ;;  %v509_v10 = vmul.f32 -0.5, %v811_v6  ;;  %v512_v18 = vand.u32 2147483647, %v811_v6 }
  0xec   : > { %812 = vlog2.f32 %v497_v7  ;;  %v501_v13 = vadd.f32 1.0, %v500_v8  ;;  %vm504_vm4 = vcmp.lt.f32.partialorder %v503_v17, 0.0004427343 }
  0xed   : > { %814 = vlog2.f32 %v506_v9  ;;  %v510_v14 = vadd.f32 1.0, %v509_v10  ;;  %vm513_vm5 = vcmp.lt.f32.partialorder %v512_v18, 0.0004427343 }
  0xee   : > { %v502_v24 = vmul.f32 %v809_v5, %v501_v13 }
  0xef   : > { %v511_v26 = vmul.f32 %v811_v6, %v510_v14 }
  0xf2   : > { %v813_v19 = vpop.eup %812 }
  0xf3   : > { %v815_v20 = vpop.eup %814  ;;  %v499_v23 = vmul.f32 0.6931472, %v813_v19 }
  0xf4   : > { %v508_v25 = vmul.f32 0.6931472, %v815_v20 }
  0xf5   : > { %v505_v28 = vsel %vm504_vm4, %v502_v24, %v499_v23 }
  0xf6   : > { %v514_v4 = vsel %vm513_vm5, %v511_v26, %v508_v25  ;;  %v515_v31 = vadd.f32 %v505_v28, %v487_v29 }
  0xf7   : > { %v516_v30 = vadd.f32 %v514_v4, %v488_v27 }
  0xf9   : > { %v519_v32 = vrot.slane %v516_v30, 7 }
  0xfb   : > { %v520_v33 = vsel %vm271_vm2, %v515_v31, %v519_v32 }
  0xfc   : > { %v522_v34 = vmul.f32 %v520_v33, %v291_v3 }
  0xfe   : > { %v524_v35 = vperm.slane %v522_v34, 0  ;;  %v525_v36 = vperm.slane %v522_v34, 1 }
 0x100   : > { %v528_v37 = vsel %vm271_vm2, %v524_v35, 0.0  ;;  %v529_v38 = vsel %vm271_vm2, %v525_v36, 0.0 }
 0x101   : > { %v530_v39 = vadd.f32 %v529_v38, %v528_v37 }
 0x103   : > { %531 = vadd.xlane.f32.xlu0 %v530_v39 }
 0x104   : > { %843 = shalt.err (!%p840_p3)
}
 0x105   : > { %763 = dma.vmem_to_hbm [thread:$0]  (%p989_p5), %s566_s27, 32, %s568_s29, %s545_s30  }
 0x106   : > { %s579_s13 = sshll.u32 %s1101_s14, 4  ;;  %s581_s15 = sshll.u32 %s577_s21, 4  ;;  %s580_s13 = int_to_ptr.vmem [resolvable:$true] %s579_s13  ;;  %s582_s15 = int_to_ptr.hbm [resolvable:$true] %s581_s15 }
 0x107   : > { %s550_s1 = scalar_lea.sflag [#allocation7], %s1092_s22  ;;  %s858_s18 = sshra.s32 %s582_s15, 4  ;;  %s859_s18 = int_to_ptr.hbm [resolvable:$true] %s858_s18 }
 0x108   : > { %s860_s19 = scalar_lea.hbm %s859_s18, 2  ;;  %s864_s11 = scalar_lea.hbm %s1166_s5, 4 }
 0x109   : > { %p861_p4 = scmp.ne.s32.totalorder %s859_s18, %s860_s19  ;;  %p865_p9 = scmp.lt.s32.totalorder %s859_s18, %s1166_s5 }
 0x10a   : > { %p866_p10 = scmp.lt.s32.totalorder %s864_s11, %s860_s19 }
 0x10b   : > { %p862_p7 = pnand %p861_p4, %p989_p5 }
 0x10c   : > { %p867_p11 = por %p866_p10, %p865_p9 }
 0x10d   : > { %p863_p8 = pneg %p862_p7 }
 0x10f   : > { %p868_p12 = pnand %p867_p11, %p863_p8 }
 0x111   : > { %871 = shalt.err (!%p868_p12)
}
 0x112   : > { %764 = dma.vmem_to_hbm [thread:$0]  (%p989_p5), %s580_s13, 32, %s582_s15, %s550_s1   ;;  %vm542_vm6 = vcmask 0  }
 0x113   : > { %s260_s27 = scalar_lea.vmem %s1167_s6, %s1001_s10 }
 0x176   : > { %v532_v40 = vpop.xlane.xlu0 %531 }
 0x177   : > { %v533_v41 = vrot.slane %v532_v40, 4 }
 0x179   : > { %v534_v42 = vadd.f32 %v533_v41, %v532_v40 }
 0x17b   : > { %v535_v43 = vrot.slane %v534_v42, 2 }
 0x17d   : > { %v536_v44 = vadd.f32 %v535_v43, %v534_v42 }
 0x17f   : > { %v537_v45 = vrot.slane %v536_v44, 1 }
 0x181   : > { %v538_v46 = vadd.f32 %v537_v45, %v536_v44 }
 0x183   : > { %761 = vpush %v538_v46 }
 0x1b4   : > { %s762_s22 = spop %761 }
 0x1b5   : > { %v540_v47 = vstv %s762_s22 }
 0x1b6   : > { %v541_v48 = vmul.f32 0.00390625, %v540_v47 }
 0x1b8   : > { %543 = vst.msk [vmem:[%s260_s27] sm:$0x1] %vm542_vm6, %v541_v48 }
 0x1b9 PF: > { %p774_p5 = scmp.ge.s32.totalorder %s910_s26, 2  ;;  %s596_s8 = sand.u32 1, %s898_s23  }
 0x1ba   : > { %s597_s29 = scalar_lea.sflag [#allocation5], %s596_s8 }
 0x1bb   : > { %p768_p13 = pnand %p774_p5, %p993_p6 }
 0x1bd   : > { %p769_p0 = pneg %p768_p13 }
 0x1bf   : > { %889 = dma.done.wait (%p769_p0), %s597_s29, 32  }
 0x1c0   : > { %891 = vsyncadd (%p769_p0), %s597_s29, 4294967264  ;;  %s607_s30 = scalar_lea.sflag [#allocation7], %s596_s8 }
 0x1c1   : > { %893 = dma.done.wait (%p769_p0), %s607_s30, 32  }
 0x1c2   : > { %895 = vsyncadd (%p769_p0), %s607_s30, 4294967264  ;;  %p21_p1 = scmp.ge.s32.totalorder %s976_s28, 4   ;;  %s1174_s23 = smov %s902_s24 }
 0x1c3   : > { %s1175_s24 = smov %s906_s25  ;;  %s1176_s25 = smov %s987_s7 }
 0x1c4   : > { %s1177_s26 = smov %s976_s28  ;;  %23 = sbr.rel (!%p21_p1) target bundleno = 9 (0x9), region = 99 }
 0x1c9   :  { %619 = vsyncpa [#allocation5], 1 }
 0x1ca   :  { %621 = vsyncpa [#allocation5 + $0x1], 1 }
 0x1cb   :  { %622 = vsyncpa [#allocation7], 1 }
 0x1cc   :  { %624 = vsyncpa [#allocation7 + $0x1], 1 }

</bundles_post_ra>
